<compile_context>
chip_gen: v6e
topology: v6e:2x2x1
jax: 0.10.0
libtpu: 0.0.40
codegen_flags: <defaults>
</compile_context>

<pallas_src>
import functools

import jax
import jax.numpy as jnp
from jax.experimental import pallas as pl
from jax.experimental.pallas import tpu as pltpu


# ----------------------------- Pallas kernel ------------------------------- #

def _gcn_fused_kernel(a_ref, x_ref, w_ref, o_ref):
    """Fused forward.

    a_ref: (N_pad, N_pad)   precomputed normalized adjacency (zero padded)
    x_ref: (N_pad, F)       node features (zero padded rows)
    w_ref: (F_pad+32, 128)  packed weights/biases slab:
             rows [0, F)              lanes [0,4)  : W1           (F, 4)
             rows [F_pad, F_pad+4)    lanes [0,4)  : W2           (4, 4)
             rows [F_pad+8, F_pad+12) lanes [0,2)  : W3           (4, 2)
             rows [F_pad+16,F_pad+18) lanes [0,128): Wc_packed = [Wc | I2 | 0]
             rows [F_pad+24,F_pad+32)              : bias block (8, 128):
                 row 0: b1 in lanes [0,4)
                 row 1: b2 in lanes [0,4)
                 row 2: b3 in lanes [0,2)
                 row 3: bc_packed in lanes [0,128) (bc in [0,C), zeros after)
    o_ref: (N_pad, 128)     lane-dense output slab [out | h | zeros]
    """
    f = x_ref.shape[1]
    r0 = ((f + 7) // 8) * 8  # sublane-aligned start of the W2/W3/Wc/bias blocks

    a = a_ref[...]                               # (N_pad, N_pad)
    x = x_ref[...]                               # (N_pad, F)

    # Static, sublane-aligned slices of the packed weight slab (zero cost).
    w1 = w_ref[0:f, 0:4]                         # (F, 4)
    w2 = w_ref[r0:r0 + 4, 0:4]                   # (4, 4)
    w3 = w_ref[r0 + 8:r0 + 12, 0:2]              # (4, 2)
    wc = w_ref[r0 + 16:r0 + 18, :]               # (2, 128) = [Wc | I2 | 0]
    bias_blk = w_ref[r0 + 24:r0 + 32, :]         # (8, 128): one aligned load
    b1 = bias_blk[0:1, 0:4]
    b2 = bias_blk[1:2, 0:4]
    b3 = bias_blk[2:3, 0:2]
    bc = bias_blk[3:4, :]                        # (1, 128)

    def gcn(h_in, w, b):
        # Projection-first (X W then A(...)) is the cheaper order at these shapes.
        xw = jnp.dot(h_in, w, preferred_element_type=jnp.float32)
        agg = jnp.dot(a, xw, preferred_element_type=jnp.float32)
        return jnp.tanh(agg + b)

    h = gcn(x, w1, b1)      # (N_pad, 4)
    h = gcn(h, w2, b2)      # (N_pad, 4)
    h = gcn(h, w3, b3)      # (N_pad, 2)

    # Lane-dense (N_pad, 128) slab straight off the MXU: [out | h | zeros].
    o_ref[...] = jnp.dot(h, wc, preferred_element_type=jnp.float32) + bc


_VMEM_SPEC = pl.BlockSpec(memory_space=pltpu.MemorySpace.VMEM)


# ------------------------------- JAX glue ---------------------------------- #

def _round_up(n, m):
    return ((n + m - 1) // m) * m


def normalized_adjacency(edge_index, num_nodes):
    """A_hat = D^{-1/2} (A + I) D^{-1/2}; messages flow src -> dst (A[dst, src]=1).

    Called ONCE at setup (static graph); never in the forward hot path.
    Note: duplicate edges are deduplicated (differs from PyG only for multi-edges).
    """
    src, dst = edge_index[0], edge_index[1]
    a = jnp.zeros((num_nodes, num_nodes), jnp.float32)
    a = a.at[dst, src].set(1.0)
    a = a + jnp.eye(num_nodes, dtype=jnp.float32)
    deg = a.sum(axis=1)
    d_inv_sqrt = 1.0 / jnp.sqrt(deg)  # self-loops guarantee deg >= 1
    return d_inv_sqrt[:, None] * a * d_inv_sqrt[None, :]


def init_params(num_features, num_classes):
    # Deterministic glorot-uniform init (mirrors GCNConv / Linear shapes).
    # TODO(synk): does not numerically match torch.manual_seed(12345) defaults.
    key = jax.random.PRNGKey(12345)
    ks = jax.random.split(key, 4)

    def glorot(k, shape):
        fan_in, fan_out = shape
        lim = jnp.sqrt(6.0 / (fan_in + fan_out))
        return jax.random.uniform(k, shape, jnp.float32, -lim, lim)

    return {
        "conv1_w": glorot(ks[0], (num_features, 4)),
        "conv1_b": jnp.zeros((4,), jnp.float32),
        "conv2_w": glorot(ks[1], (4, 4)),
        "conv2_b": jnp.zeros((4,), jnp.float32),
        "conv3_w": glorot(ks[2], (4, 2)),
        "conv3_b": jnp.zeros((2,), jnp.float32),
        # torch Linear(2, num_classes) has weight [num_classes, 2]; stored transposed.
        "cls_w": glorot(ks[3], (2, num_classes)),
        "cls_b": jnp.zeros((num_classes,), jnp.float32),
    }


def pack_weight_slab(params, num_features, num_classes):
    """Pack all weights/biases into one (F_pad+32, 128) f32 slab (built once)."""
    f_pad = _round_up(num_features, 8)
    rows = f_pad + 32
    slab = jnp.zeros((rows, 128), jnp.float32)
    # W1
    slab = slab.at[0:num_features, 0:4].set(params["conv1_w"])
    # W2 / W3
    slab = slab.at[f_pad:f_pad + 4, 0:4].set(params["conv2_w"])
    slab = slab.at[f_pad + 8:f_pad + 12, 0:2].set(params["conv3_w"])
    # Wc_packed = [Wc | I2 | 0]  (folds the output packing into the matmul)
    slab = slab.at[f_pad + 16:f_pad + 18, 0:num_classes].set(params["cls_w"])
    slab = slab.at[f_pad + 16:f_pad + 18,
                   num_classes:num_classes + 2].set(jnp.eye(2, dtype=jnp.float32))
    # Bias block
    slab = slab.at[f_pad + 24, 0:4].set(params["conv1_b"])
    slab = slab.at[f_pad + 25, 0:4].set(params["conv2_b"])
    slab = slab.at[f_pad + 26, 0:2].set(params["conv3_b"])
    slab = slab.at[f_pad + 27, 0:num_classes].set(params["cls_b"])
    return slab


@functools.partial(jax.jit, static_argnames=("num_classes",))
def gcn_forward(a_pad, w_slab, x, *, num_classes):
    """Forward pass. a_pad and w_slab are precomputed at setup; only x is padded here."""
    n = x.shape[0]
    n_pad = a_pad.shape[0]
    x_p = jnp.pad(x, ((0, n_pad - n), (0, 0)))   # only per-call padding

    slab = pl.pallas_call(
        _gcn_fused_kernel,
        out_shape=jax.ShapeDtypeStruct((n_pad, 128), jnp.float32),
        in_specs=[_VMEM_SPEC, _VMEM_SPEC, _VMEM_SPEC],
        out_specs=_VMEM_SPEC,
    )(a_pad, x_p, w_slab)

    out = slab[:n, :num_classes]
    h = slab[:n, num_classes:num_classes + 2]
    return out, h


# --------------------------------- main ------------------------------------ #

if __name__ == "__main__":
    NUM_NODES = 34       # KarateClub-style graph
    NUM_FEATURES = 34    # dataset.num_features
    NUM_CLASSES = 4      # dataset.num_classes

    key = jax.random.PRNGKey(0)
    x = jax.random.normal(key, (NUM_NODES, NUM_FEATURES), jnp.float32)

    # Deterministic synthetic undirected edges: ring + a few chords.
    src = jnp.arange(NUM_NODES, dtype=jnp.int32)
    dst = (src + 1) % NUM_NODES
    chord_src = jnp.array([0, 5, 10, 15, 20, 25], dtype=jnp.int32)
    chord_dst = jnp.array([17, 22, 27, 2, 7, 12], dtype=jnp.int32)
    s = jnp.concatenate([src, chord_src])
    d = jnp.concatenate([dst, chord_dst])
    edge_index = jnp.stack(
        [jnp.concatenate([s, d]), jnp.concatenate([d, s])], axis=0
    )  # both directions -> undirected graph, shape [2, 80]

    # --- Setup (hoisted out of the forward hot path, built once) ------------ #
    n_pad = _round_up(NUM_NODES, 8)
    a_hat = normalized_adjacency(edge_index, NUM_NODES)
    a_pad = jnp.pad(a_hat, ((0, n_pad - NUM_NODES), (0, n_pad - NUM_NODES)))
    params = init_params(NUM_FEATURES, NUM_CLASSES)
    w_slab = pack_weight_slab(params, NUM_FEATURES, NUM_CLASSES)
    a_pad, w_slab = jax.block_until_ready((a_pad, w_slab))

    # --- Forward ------------------------------------------------------------ #
    out, h = gcn_forward(a_pad, w_slab, x, num_classes=NUM_CLASSES)
    jax.block_until_ready((out, h))

    assert out.shape == (NUM_NODES, NUM_CLASSES) and out.dtype == jnp.float32
    assert h.shape == (NUM_NODES, 2) and h.dtype == jnp.float32
    assert bool(jnp.all(jnp.isfinite(out))) and bool(jnp.all(jnp.isfinite(h)))
    print("KERNEL_OK")
</pallas_src>

<mosaic_0001>
module attributes {stable_mosaic.version = 11 : i64} {
  func.func @_gcn_fused_kernel(%arg0: memref<40x40xf32, #tpu.memory_space<vmem>>, %arg1: memref<40x34xf32, #tpu.memory_space<vmem>>, %arg2: memref<72x128xf32, #tpu.memory_space<vmem>>, %arg3: memref<40x128xf32, #tpu.memory_space<vmem>>) attributes {dimension_semantics = [], scalar_prefetch = 0 : i64, scratch_operands = 0 : i64, tpu.core_type = #tpu.core_type<tc>} {
    %c0 = arith.constant 0 : index
    %c0_0 = arith.constant 0 : index
    %0 = vector.load %arg0[%c0, %c0_0] : memref<40x40xf32, #tpu.memory_space<vmem>>, vector<40x40xf32>
    %c0_1 = arith.constant 0 : index
    %c0_2 = arith.constant 0 : index
    %1 = vector.load %arg1[%c0_1, %c0_2] : memref<40x34xf32, #tpu.memory_space<vmem>>, vector<40x34xf32>
    %c0_3 = arith.constant 0 : index
    %c0_4 = arith.constant 0 : index
    %2 = vector.load %arg2[%c0_3, %c0_4] : memref<72x128xf32, #tpu.memory_space<vmem>>, vector<34x4xf32>
    %c40 = arith.constant 40 : index
    %c0_5 = arith.constant 0 : index
    %3 = vector.load %arg2[%c40, %c0_5] : memref<72x128xf32, #tpu.memory_space<vmem>>, vector<4x4xf32>
    %c48 = arith.constant 48 : index
    %c0_6 = arith.constant 0 : index
    %4 = vector.load %arg2[%c48, %c0_6] : memref<72x128xf32, #tpu.memory_space<vmem>>, vector<4x2xf32>
    %c56 = arith.constant 56 : index
    %c0_7 = arith.constant 0 : index
    %5 = vector.load %arg2[%c56, %c0_7] : memref<72x128xf32, #tpu.memory_space<vmem>>, vector<2x128xf32>
    %c64 = arith.constant 64 : index
    %c0_8 = arith.constant 0 : index
    %6 = vector.load %arg2[%c64, %c0_8] : memref<72x128xf32, #tpu.memory_space<vmem>>, vector<8x128xf32>
    %7 = vector.extract_strided_slice %6 {offsets = [0, 0], sizes = [1, 4], strides = [1, 1]} : vector<8x128xf32> to vector<1x4xf32>
    %8 = vector.extract_strided_slice %6 {offsets = [1, 0], sizes = [1, 4], strides = [1, 1]} : vector<8x128xf32> to vector<1x4xf32>
    %9 = vector.extract_strided_slice %6 {offsets = [2, 0], sizes = [1, 2], strides = [1, 1]} : vector<8x128xf32> to vector<1x2xf32>
    %10 = vector.extract_strided_slice %6 {offsets = [3, 0], sizes = [1, 128], strides = [1, 1]} : vector<8x128xf32> to vector<1x128xf32>
    %cst = arith.constant dense<0.000000e+00> : vector<40x4xf32>
    %11 = tpu.matmul %1, %2, %cst {dimension_numbers = #tpu.dot_dimension_numbers<[1], [0], [0], [1], [0, 0, 1, 1], [], []>} : vector<40x34xf32>, vector<34x4xf32>, vector<40x4xf32> -> vector<40x4xf32>
    %cst_9 = arith.constant dense<0.000000e+00> : vector<40x4xf32>
    %12 = tpu.matmul %0, %11, %cst_9 {dimension_numbers = #tpu.dot_dimension_numbers<[1], [0], [0], [1], [0, 0, 1, 1], [], []>} : vector<40x40xf32>, vector<40x4xf32>, vector<40x4xf32> -> vector<40x4xf32>
    %13 = vector.broadcast %7 : vector<1x4xf32> to vector<40x4xf32>
    %14 = arith.addf %12, %13 : vector<40x4xf32>
    %15 = math.tanh %14 : vector<40x4xf32>
    %cst_10 = arith.constant dense<0.000000e+00> : vector<40x4xf32>
    %16 = tpu.matmul %15, %3, %cst_10 {dimension_numbers = #tpu.dot_dimension_numbers<[1], [0], [0], [1], [0, 0, 1, 1], [], []>} : vector<40x4xf32>, vector<4x4xf32>, vector<40x4xf32> -> vector<40x4xf32>
    %cst_11 = arith.constant dense<0.000000e+00> : vector<40x4xf32>
    %17 = tpu.matmul %0, %16, %cst_11 {dimension_numbers = #tpu.dot_dimension_numbers<[1], [0], [0], [1], [0, 0, 1, 1], [], []>} : vector<40x40xf32>, vector<40x4xf32>, vector<40x4xf32> -> vector<40x4xf32>
    %18 = vector.broadcast %8 : vector<1x4xf32> to vector<40x4xf32>
    %19 = arith.addf %17, %18 : vector<40x4xf32>
    %20 = math.tanh %19 : vector<40x4xf32>
    %cst_12 = arith.constant dense<0.000000e+00> : vector<40x2xf32>
    %21 = tpu.matmul %20, %4, %cst_12 {dimension_numbers = #tpu.dot_dimension_numbers<[1], [0], [0], [1], [0, 0, 1, 1], [], []>} : vector<40x4xf32>, vector<4x2xf32>, vector<40x2xf32> -> vector<40x2xf32>
    %cst_13 = arith.constant dense<0.000000e+00> : vector<40x2xf32>
    %22 = tpu.matmul %0, %21, %cst_13 {dimension_numbers = #tpu.dot_dimension_numbers<[1], [0], [0], [1], [0, 0, 1, 1], [], []>} : vector<40x40xf32>, vector<40x2xf32>, vector<40x2xf32> -> vector<40x2xf32>
    %23 = vector.broadcast %9 : vector<1x2xf32> to vector<40x2xf32>
    %24 = arith.addf %22, %23 : vector<40x2xf32>
    %25 = math.tanh %24 : vector<40x2xf32>
    %cst_14 = arith.constant dense<0.000000e+00> : vector<40x128xf32>
    %26 = tpu.matmul %25, %5, %cst_14 {dimension_numbers = #tpu.dot_dimension_numbers<[1], [0], [0], [1], [0, 0, 1, 1], [], []>} : vector<40x2xf32>, vector<2x128xf32>, vector<40x128xf32> -> vector<40x128xf32>
    %27 = vector.broadcast %10 : vector<1x128xf32> to vector<40x128xf32>
    %28 = arith.addf %26, %27 : vector<40x128xf32>
    %c0_15 = arith.constant 0 : index
    %c0_16 = arith.constant 0 : index
    %29 = vector.load %arg3[%c0_15, %c0_16] : memref<40x128xf32, #tpu.memory_space<vmem>>, vector<40x128xf32>
    tpu.vector_store %arg3[%c0_15, %c0_16], %28 {strides = array<i32>} : memref<40x128xf32, #tpu.memory_space<vmem>>, vector<40x128xf32>,
    return
  }
}

</mosaic_0001>

<bundles_post_ra>
// kernel: gcn_forward.1
= control target key start
LH: loop header
LB: loop body
LE: loop exit
PB: predicated region body
PF: predicated region fallthrough
CT: control target
= control target key end

     0   :  { %8 = vsyncpa [#allocation3], 0  ;;  %s1126_s12 = smov [#allocation2]   ;;  %s1386_s0 = inlined_call_operand.hbm [shape: f32[40,40], index: 0, kind: input, shape index: {}]   ;;  %s1387_s1 = inlined_call_operand.vmem [shape: f32[40,34], index: 1, kind: input, shape index: {}]   ;;  %s1388_s2 = inlined_call_operand.vmem [shape: f32[72,128], index: 2, kind: input, shape index: {}]   ;;  %s1389_s3 = inlined_call_operand.vmem [shape: f32[40,128], index: 3, kind: output, shape index: {}]  }
   0x1   :  { %s14_s13 = sshll.u32 %s1126_s12, 4  ;;  %s15_s13 = int_to_ptr.vmem [resolvable:$true] %s14_s13 }
   0x2   :  { %s1112_s14 = scalar_lea.vmem %s15_s13, 640  ;;  %p1117_p1 = scmp.lt.s32.totalorder %s15_s13, %s15_s13 }
   0x3   :  { %p1113_p0 = scmp.ne.s32.totalorder %s15_s13, %s1112_s14  ;;  %p1118_p2 = scmp.lt.s32.totalorder %s1112_s14, %s1112_s14 }
   0x5   :  { %p1119_p3 = por %p1118_p2, %p1117_p1 }
   0x7   :  { %p1120_p4 = pnand %p1119_p3, %p1113_p0 }
   0x9   :  { %1123 = shalt.err (!%p1120_p4)
}
   0xa   :  { %s1127_s15 = smov 128   ;;  %s1128_s16 = smov 8  }
   0xb   :  { %20 = dma.hbm_to_vmem [thread:$0]  %s1386_s0, 640, %s15_s13, [#allocation3], %s1127_s15, %s1127_s15, %s1128_s16  }
   0xc   :  { %1124 = dma.done.wait [#allocation3], 640  }
   0xd   :  { %1125 = vsyncadd [#allocation3], 4294966656  ;;  %v1129_v0 = vmov 0.0   ;;  %vm1130_vm0 = vmmov 0   ;;  %vm63_vm1 = vcmask 1041408   ;;  %v41_v2 = vld [vmem:[%s1388_s2 + $0x18] sm:$0xff]  ;;  %v157_v27 = vlaneseq }
   0xe   :  { %908 = vmatprep.subr.mxu0 %v1129_v0  ;;  %1059 = vmatprep.subr.mxu1 %v1129_v0  ;;  %v42_v1 = vld [vmem:[%s1388_s2 + $0x20] sm:$0x3]  ;;  %v40_v3 = vld [vmem:[%s1388_s2 + $0x10] sm:$0xff]  ;;  %v39_v4 = vld [vmem:[%s1388_s2 + $0x8] sm:$0xff]  ;;  %vm47_vm2 = vcmask 277504   ;;  %vm161_vm3 = vcmask 326656  }
   0xf   :  { %918 = vmatprep.mubr.msk.f32.mxu0 %vm1130_vm0, %v1129_v0  ;;  %927 = vmatprep.mubr.msk.f32.mxu1 %vm1130_vm0, %v1129_v0  ;;  %v38_v5 = vld [vmem:[%s1388_s2] sm:$0xff]  ;;  %v36_v7 = vld [vmem:[%s1387_s1 + $0x18] sm:$0xff]  ;;  %v34_v8 = vld [vmem:[%s1387_s1 + $0x8] sm:$0xff]  ;;  %vm288_vm4 = vcmask 1043456   ;;  %v1257_v28 = vshrl.u32 %v157_v27, 7  ;;  %vm272_vm5 = vcmask 31744  }
  0x10   :  { %909 = vmatpush3.msk.msra.mxu0 %vm63_vm1, %v42_v1  ;;  %1064 = vmatpush3.msk.msra.mxu1 %vm63_vm1, %v42_v1  ;;  %v33_v6 = vld [vmem:[%s1387_s1] sm:$0xff]  ;;  %v35_v10 = vld [vmem:[%s1387_s1 + $0x10] sm:$0xff]  ;;  %v1228_v22 = vld [vmem:[#allocation2 + $0x8] sm:$0xff]  ;;  %vm692_vm6 = vcmask 15360  }
  0x11   :  { %910 = vmatprep.subr.mxu0 %v1129_v0  ;;  %1060 = vmatprep.subr.mxu1 %v1129_v0  ;;  %v37_v9 = vld [vmem:[%s1387_s1 + $0x20] sm:$0xff]  ;;  %v1234_v23 = vld [vmem:[#allocation2 + $0x10] sm:$0xff]  ;;  %v1240_v24 = vld [vmem:[#allocation2 + $0x18] sm:$0xff]  ;;  %v159_v29 = vsub.s32 0, %v1257_v28  ;;  %v384_v63 = vsub.s32 1, %v1257_v28 }
  0x12   :  { %911 = vmatpush3.msra.mxu0 %v41_v2  ;;  %1065 = vmatpush3.msra.mxu1 %v41_v2  ;;  %v1220_v21 = vld [vmem:[#allocation2] sm:$0xff]  ;;  %v43_v26 = vld [vmem:[%s1388_s2 + $0x28] sm:$0xf]  ;;  %v44_v62 = vld [vmem:[%s1388_s2 + $0x30] sm:$0xf] }
  0x13   :  { %912 = vmatprep.subr.mxu0 %v1129_v0  ;;  %1061 = vmatprep.subr.mxu1 %v1129_v0  ;;  %v1246_v25 = vld [vmem:[#allocation2 + $0x20] sm:$0xff]  ;;  %v45_v27 = vld [vmem:[%s1388_s2 + $0x38] sm:$0x3] }
  0x14   :  { %913 = vmatpush3.msra.mxu0 %v40_v3  ;;  %1066 = vmatpush3.msra.mxu1 %v40_v3  ;;  %v1263_v30 = vld [vmem:[%s1388_s2 + $0x40] sm:$0xff] }
  0x15   :  { %914 = vmatprep.subr.mxu0 %v1129_v0  ;;  %1062 = vmatprep.subr.mxu1 %v1129_v0  ;;  %v160_v31 = vrot.slane %v1263_v30, %v159_v29  ;;  %v385_v1 = vrot.slane %v1263_v30, %v384_v63 }
  0x16   :  { %915 = vmatpush3.msra.mxu0 %v39_v4  ;;  %1067 = vmatpush3.msra.mxu1 %v39_v4 }
  0x17   :  { %916 = vmatprep.subr.mxu0 %v1129_v0  ;;  %1063 = vmatprep.subr.mxu1 %v1129_v0 }
  0x18   :  { %917 = vmatpush3.msra.mxu0 %v38_v5  ;;  %1068 = vmatpush3.msra.mxu1 %v38_v5 }
  0x19   :  { %919 = vmatmul.mubr.msk.f32.vlgmr.msra.gmra.mxu0 %vm47_vm2, %v33_v6  ;;  %928 = vmatmul.mubr.msk.f32.vlgmr.msra.gmra.mxu1 %vm47_vm2, %v36_v7 }
  0x1a   :  { %921 = vmatprep.mubr.msk.f32.mxu0 %vm1130_vm0, %v1129_v0  ;;  %930 = vmatprep.mubr.msk.f32.mxu1 %vm1130_vm0, %v1129_v0 }
  0x1b   :  { %933 = vmatprep.subr.mxu1 %v1129_v0  ;;  %958 = vmatprep.subr.mxu0 %v1129_v0 }
  0x1c   :  { %959 = vmatpush3.msk.msra.mxu0 %vm288_vm4, %v43_v26 }
  0x1d   :  { %922 = vmatmul.mubr.msk.f32.gmra.mxu0 %vm47_vm2, %v34_v8  ;;  %931 = vmatmul.mubr.msk.f32.gmra.mxu1 %vm47_vm2, %v37_v9 }
  0x1e   :  { %924 = vmatprep.mubr.msk.f32.mxu0 %vm1130_vm0, %v1129_v0  ;;  %943 = vmatprep.mubr.msk.f32.mxu1 %vm1130_vm0, %v1129_v0 }
  0x1f   :  { %1000 = vmatprep.subr.mxu0 %v1129_v0 }
  0x21   :  { %925 = vmatmul.mubr.msk.f32.gmra.mxu0 %vm47_vm2, %v35_v10 }
  0x22   :  { %960 = vmatprep.mubr.msk.f32.mxu0 %vm1130_vm0, %v1129_v0 }
  0xd9   :  { %v133_v11 = vpop.f32.mrf.mxu0  ;;  %v148_v12 = vpop.f32.mrf.mxu1 }
  0xdb   :  { %v920_v13 = vpop.f32.mrf.mxu0  ;;  %v929_v14 = vpop.f32.mrf.mxu1 }
  0xdd   :  { %v138_v15 = vpop.f32.mrf.mxu0  ;;  %v153_v16 = vpop.f32.mrf.mxu1 }
  0xde   :  { %934 = vmatpush3.msra.mxu1 %v153_v16 }
  0xdf   :  { %v923_v17 = vpop.f32.mrf.mxu0  ;;  %v932_v18 = vpop.f32.mrf.mxu1  ;;  %935 = vmatprep.subr.mxu1 %v1129_v0 }
  0xe0   :  { %936 = vmatpush3.msra.mxu1 %v148_v12 }
  0xe1   :  { %v143_v19 = vpop.f32.mrf.mxu0  ;;  %937 = vmatprep.subr.mxu1 %v1129_v0 }
  0xe2   :  { %938 = vmatpush3.msra.mxu1 %v143_v19 }
  0xe3   :  { %v926_v20 = vpop.f32.mrf.mxu0  ;;  %939 = vmatprep.subr.mxu1 %v1129_v0 }
  0xe4   :  { %940 = vmatpush3.msra.mxu1 %v138_v15 }
  0xe5   :  { %941 = vmatprep.subr.mxu1 %v1129_v0 }
  0xe6   :  { %942 = vmatpush3.msra.mxu1 %v133_v11 }
  0xe7   :  { %944 = vmatmul.mubr.msk.f32.vlgmr.msra.gmra.mxu1 %vm161_vm3, %v1220_v21  ;;  %975 = vmatprep.subr.mxu1 %v1129_v0 }
  0xe8   :  { %946 = vmatprep.mubr.msk.f32.mxu1 %vm1130_vm0, %v1129_v0 }
  0xeb   :  { %947 = vmatmul.mubr.msk.f32.gmra.mxu1 %vm161_vm3, %v1228_v22 }
  0xec   :  { %949 = vmatprep.mubr.msk.f32.mxu1 %vm1130_vm0, %v1129_v0 }
  0xef   :  { %950 = vmatmul.mubr.msk.f32.gmra.mxu1 %vm161_vm3, %v1234_v23 }
  0xf0   :  { %952 = vmatprep.mubr.msk.f32.mxu1 %vm1130_vm0, %v1129_v0 }
  0xf3   :  { %953 = vmatmul.mubr.msk.f32.gmra.mxu1 %vm161_vm3, %v1240_v24 }
  0xf4   :  { %955 = vmatprep.mubr.msk.f32.mxu1 %vm1130_vm0, %v1129_v0 }
  0xf7   :  { %956 = vmatmul.mubr.msk.f32.gmra.mxu1 %vm161_vm3, %v1246_v25 }
  0xf8   :  { %985 = vmatprep.mubr.msk.f32.mxu1 %vm1130_vm0, %v1129_v0 }
 0x1a7   :  { %v243_v32 = vpop.f32.mrf.mxu1 }
 0x1a8   :  { %v244_v33 = vadd.f32 %v243_v32, %v160_v31 }
 0x1a9   :  { %v945_v34 = vpop.f32.mrf.mxu1 }
 0x1aa   :  { %1074 = vtanh.f32 %v244_v33 }
 0x1ab   :  { %v248_v35 = vpop.f32.mrf.mxu1 }
 0x1ac   :  { %v249_v36 = vadd.f32 %v248_v35, %v160_v31 }
 0x1ad   :  { %v948_v37 = vpop.f32.mrf.mxu1 }
 0x1ae   :  { %1076 = vtanh.f32 %v249_v36 }
 0x1af   :  { %v253_v38 = vpop.f32.mrf.mxu1 }
 0x1b0   :  { %v254_v39 = vadd.f32 %v253_v38, %v160_v31 }
 0x1b1   :  { %v951_v40 = vpop.f32.mrf.mxu1 }
 0x1b2   :  { %1078 = vtanh.f32 %v254_v39 }
 0x1b3   :  { %v258_v41 = vpop.f32.mrf.mxu1 }
 0x1b4   :  { %v259_v42 = vadd.f32 %v258_v41, %v160_v31 }
 0x1b5   :  { %v954_v43 = vpop.f32.mrf.mxu1 }
 0x1b6   :  { %1080 = vtanh.f32 %v259_v42 }
 0x1b7   :  { %v1075_v44 = vpop.eup %1074  ;;  %v263_v45 = vpop.f32.mrf.mxu1 }
 0x1b8   :  { %v264_v46 = vadd.f32 %v263_v45, %v160_v31  ;;  %961 = vmatmul.mubr.msk.f32.vlgmr.msra.gmra.mxu0 %vm272_vm5, %v1075_v44 }
 0x1b9   :  { %v957_v47 = vpop.f32.mrf.mxu1  ;;  %963 = vmatprep.mubr.msk.f32.mxu0 %vm1130_vm0, %v1129_v0  ;;  %1001 = vmatpush3.msk.msra.mxu0 %vm288_vm4, %v44_v62 }
 0x1ba   :  { %1082 = vtanh.f32 %v264_v46  ;;  %1042 = vmatprep.subr.mxu0 %v1129_v0 }
 0x1bb   :  { %v1077_v48 = vpop.eup %1076 }
 0x1bc   :  { %964 = vmatmul.mubr.msk.f32.gmra.mxu0 %vm272_vm5, %v1077_v48 }
 0x1bd   :  { %966 = vmatprep.mubr.msk.f32.mxu0 %vm1130_vm0, %v1129_v0 }
 0x1bf   :  { %v1079_v49 = vpop.eup %1078 }
 0x1c0   :  { %967 = vmatmul.mubr.msk.f32.gmra.mxu0 %vm272_vm5, %v1079_v49 }
 0x1c1   :  { %969 = vmatprep.mubr.msk.f32.mxu0 %vm1130_vm0, %v1129_v0 }
 0x1c3   :  { %v1081_v50 = vpop.eup %1080 }
 0x1c4   :  { %970 = vmatmul.mubr.msk.f32.gmra.mxu0 %vm272_vm5, %v1081_v50 }
 0x1c5   :  { %972 = vmatprep.mubr.msk.f32.mxu0 %vm1130_vm0, %v1129_v0 }
 0x1c7   :  { %v1083_v51 = vpop.eup %1082 }
 0x1c8   :  { %973 = vmatmul.mubr.msk.f32.gmra.mxu0 %vm272_vm5, %v1083_v51 }
 0x1c9   :  { %1002 = vmatprep.mubr.msk.f32.mxu0 %vm1130_vm0, %v1129_v0 }
 0x278   :  { %v358_v52 = vpop.f32.mrf.mxu0 }
 0x27a   :  { %v962_v53 = vpop.f32.mrf.mxu0 }
 0x27c   :  { %v363_v54 = vpop.f32.mrf.mxu0 }
 0x27e   :  { %v965_v55 = vpop.f32.mrf.mxu0 }
 0x280   :  { %v368_v56 = vpop.f32.mrf.mxu0 }
 0x282   :  { %v968_v57 = vpop.f32.mrf.mxu0 }
 0x283   :  { %v690_v57 = vsub.s32 3, %v1257_v28 }
 0x284   :  { %v373_v58 = vpop.f32.mrf.mxu0 }
 0x286   :  { %v971_v59 = vpop.f32.mrf.mxu0 }
 0x288   :  { %v378_v60 = vpop.f32.mrf.mxu0 }
 0x289   :  { %976 = vmatpush3.msra.mxu1 %v378_v60 }
 0x28a   :  { %v974_v61 = vpop.f32.mrf.mxu0  ;;  %977 = vmatprep.subr.mxu1 %v1129_v0 }
 0x28b   :  { %978 = vmatpush3.msra.mxu1 %v373_v58  ;;  %v691_v58 = vrot.slane %v1263_v30, %v690_v57 }
 0x28c   :  { %979 = vmatprep.subr.mxu1 %v1129_v0 }
 0x28d   :  { %980 = vmatpush3.msra.mxu1 %v368_v56 }
 0x28e   :  { %981 = vmatprep.subr.mxu1 %v1129_v0 }
 0x28f   :  { %982 = vmatpush3.msra.mxu1 %v363_v54 }
 0x290   :  { %983 = vmatprep.subr.mxu1 %v1129_v0 }
 0x291   :  { %984 = vmatpush3.msra.mxu1 %v358_v52 }
 0x292   :  { %986 = vmatmul.mubr.msk.f32.vlgmr.msra.gmra.mxu1 %vm161_vm3, %v1220_v21  ;;  %1017 = vmatprep.subr.mxu1 %v1129_v0 }
 0x293   :  { %988 = vmatprep.mubr.msk.f32.mxu1 %vm1130_vm0, %v1129_v0 }
 0x296   :  { %989 = vmatmul.mubr.msk.f32.gmra.mxu1 %vm161_vm3, %v1228_v22 }
 0x297   :  { %991 = vmatprep.mubr.msk.f32.mxu1 %vm1130_vm0, %v1129_v0 }
 0x29a   :  { %992 = vmatmul.mubr.msk.f32.gmra.mxu1 %vm161_vm3, %v1234_v23 }
 0x29b   :  { %994 = vmatprep.mubr.msk.f32.mxu1 %vm1130_vm0, %v1129_v0 }
 0x29e   :  { %995 = vmatmul.mubr.msk.f32.gmra.mxu1 %vm161_vm3, %v1240_v24 }
 0x29f   :  { %997 = vmatprep.mubr.msk.f32.mxu1 %vm1130_vm0, %v1129_v0 }
 0x2a2   :  { %998 = vmatmul.mubr.msk.f32.gmra.mxu1 %vm161_vm3, %v1246_v25 }
 0x2a3   :  { %1027 = vmatprep.mubr.msk.f32.mxu1 %vm1130_vm0, %v1129_v0 }
 0x352   :  { %v452_v2 = vpop.f32.mrf.mxu1 }
 0x353   :  { %v453_v3 = vadd.f32 %v452_v2, %v385_v1 }
 0x354   :  { %v987_v4 = vpop.f32.mrf.mxu1 }
 0x355   :  { %1084 = vtanh.f32 %v453_v3 }
 0x356   :  { %v457_v5 = vpop.f32.mrf.mxu1 }
 0x357   :  { %v458_v6 = vadd.f32 %v457_v5, %v385_v1 }
 0x358   :  { %v990_v7 = vpop.f32.mrf.mxu1 }
 0x359   :  { %1086 = vtanh.f32 %v458_v6 }
 0x35a   :  { %v462_v8 = vpop.f32.mrf.mxu1 }
 0x35b   :  { %v463_v9 = vadd.f32 %v462_v8, %v385_v1 }
 0x35c   :  { %v993_v10 = vpop.f32.mrf.mxu1 }
 0x35d   :  { %1088 = vtanh.f32 %v463_v9 }
 0x35e   :  { %v467_v11 = vpop.f32.mrf.mxu1 }
 0x35f   :  { %v468_v12 = vadd.f32 %v467_v11, %v385_v1 }
 0x360   :  { %v996_v13 = vpop.f32.mrf.mxu1 }
 0x361   :  { %1090 = vtanh.f32 %v468_v12 }
 0x362   :  { %v1085_v14 = vpop.eup %1084  ;;  %v472_v15 = vpop.f32.mrf.mxu1 }
 0x363   :  { %v473_v16 = vadd.f32 %v472_v15, %v385_v1  ;;  %1003 = vmatmul.mubr.msk.f32.vlgmr.msra.gmra.mxu0 %vm272_vm5, %v1085_v14 }
 0x364   :  { %v999_v17 = vpop.f32.mrf.mxu1  ;;  %1005 = vmatprep.mubr.msk.f32.mxu0 %vm1130_vm0, %v1129_v0  ;;  %1043 = vmatpush3.msk.msra.mxu0 %vm63_vm1, %v45_v27 }
 0x365   :  { %1092 = vtanh.f32 %v473_v16 }
 0x366   :  { %v1087_v18 = vpop.eup %1086 }
 0x367   :  { %1006 = vmatmul.mubr.msk.f32.gmra.mxu0 %vm272_vm5, %v1087_v18 }
 0x368   :  { %1008 = vmatprep.mubr.msk.f32.mxu0 %vm1130_vm0, %v1129_v0 }
 0x36a   :  { %v1089_v19 = vpop.eup %1088 }
 0x36b   :  { %1009 = vmatmul.mubr.msk.f32.gmra.mxu0 %vm272_vm5, %v1089_v19 }
 0x36c   :  { %1011 = vmatprep.mubr.msk.f32.mxu0 %vm1130_vm0, %v1129_v0 }
 0x36e   :  { %v1091_v20 = vpop.eup %1090 }
 0x36f   :  { %1012 = vmatmul.mubr.msk.f32.gmra.mxu0 %vm272_vm5, %v1091_v20 }
 0x370   :  { %1014 = vmatprep.mubr.msk.f32.mxu0 %vm1130_vm0, %v1129_v0 }
 0x372   :  { %v1093_v26 = vpop.eup %1092 }
 0x373   :  { %1015 = vmatmul.mubr.msk.f32.gmra.mxu0 %vm272_vm5, %v1093_v26 }
 0x374   :  { %1044 = vmatprep.mubr.msk.f32.mxu0 %vm1130_vm0, %v1129_v0 }
 0x423   :  { %v565_v29 = vpop.f32.mrf.mxu0 }
 0x425   :  { %v1004_v31 = vpop.f32.mrf.mxu0 }
 0x427   :  { %v570_v32 = vpop.f32.mrf.mxu0 }
 0x429   :  { %v1007_v33 = vpop.f32.mrf.mxu0 }
 0x42b   :  { %v575_v34 = vpop.f32.mrf.mxu0 }
 0x42d   :  { %v1010_v35 = vpop.f32.mrf.mxu0 }
 0x42f   :  { %v580_v36 = vpop.f32.mrf.mxu0 }
 0x431   :  { %v1013_v37 = vpop.f32.mrf.mxu0 }
 0x433   :  { %v585_v38 = vpop.f32.mrf.mxu0 }
 0x434   :  { %1018 = vmatpush3.msra.mxu1 %v585_v38 }
 0x435   :  { %v1016_v39 = vpop.f32.mrf.mxu0  ;;  %1019 = vmatprep.subr.mxu1 %v1129_v0 }
 0x436   :  { %1020 = vmatpush3.msra.mxu1 %v580_v36 }
 0x437   :  { %1021 = vmatprep.subr.mxu1 %v1129_v0 }
 0x438   :  { %1022 = vmatpush3.msra.mxu1 %v575_v34 }
 0x439   :  { %1023 = vmatprep.subr.mxu1 %v1129_v0 }
 0x43a   :  { %1024 = vmatpush3.msra.mxu1 %v570_v32 }
 0x43b   :  { %1025 = vmatprep.subr.mxu1 %v1129_v0 }
 0x43c   :  { %1026 = vmatpush3.msra.mxu1 %v565_v29 }
 0x43d   :  { %1028 = vmatmul.mubr.msk.f32.vlgmr.msra.gmra.mxu1 %vm161_vm3, %v1220_v21  ;;  %v591_v21 = vsub.s32 2, %v1257_v28 }
 0x43e   :  { %1030 = vmatprep.mubr.msk.f32.mxu1 %vm1130_vm0, %v1129_v0 }
 0x441   :  { %1031 = vmatmul.mubr.msk.f32.gmra.mxu1 %vm161_vm3, %v1228_v22  ;;  %v592_v22 = vrot.slane %v1263_v30, %v591_v21 }
 0x442   :  { %1033 = vmatprep.mubr.msk.f32.mxu1 %vm1130_vm0, %v1129_v0 }
 0x445   :  { %1034 = vmatmul.mubr.msk.f32.gmra.mxu1 %vm161_vm3, %v1234_v23 }
 0x446   :  { %1036 = vmatprep.mubr.msk.f32.mxu1 %vm1130_vm0, %v1129_v0 }
 0x449   :  { %1037 = vmatmul.mubr.msk.f32.gmra.mxu1 %vm161_vm3, %v1240_v24 }
 0x44a   :  { %1039 = vmatprep.mubr.msk.f32.mxu1 %vm1130_vm0, %v1129_v0 }
 0x44d   :  { %1040 = vmatmul.mubr.msk.f32.gmra.mxu1 %vm161_vm3, %v1246_v25 }
 0x4fd   :  { %v659_v40 = vpop.f32.mrf.mxu1 }
 0x4fe   :  { %v660_v41 = vadd.f32 %v659_v40, %v592_v22 }
 0x4ff   :  { %v1029_v42 = vpop.f32.mrf.mxu1 }
 0x500   :  { %1094 = vtanh.f32 %v660_v41 }
 0x501   :  { %v664_v23 = vpop.f32.mrf.mxu1 }
 0x502   :  { %v665_v43 = vadd.f32 %v664_v23, %v592_v22 }
 0x503   :  { %v1032_v44 = vpop.f32.mrf.mxu1 }
 0x504   :  { %1096 = vtanh.f32 %v665_v43 }
 0x505   :  { %v669_v45 = vpop.f32.mrf.mxu1 }
 0x506   :  { %v670_v24 = vadd.f32 %v669_v45, %v592_v22 }
 0x507   :  { %v1035_v46 = vpop.f32.mrf.mxu1 }
 0x508   :  { %1098 = vtanh.f32 %v670_v24 }
 0x509   :  { %v674_v47 = vpop.f32.mrf.mxu1 }
 0x50a   :  { %v675_v48 = vadd.f32 %v674_v47, %v592_v22 }
 0x50b   :  { %v1038_v49 = vpop.f32.mrf.mxu1 }
 0x50c   :  { %1100 = vtanh.f32 %v675_v48 }
 0x50d   :  { %v1095_v25 = vpop.eup %1094  ;;  %v679_v50 = vpop.f32.mrf.mxu1 }
 0x50e   :  { %v680_v51 = vadd.f32 %v679_v50, %v592_v22  ;;  %1045 = vmatmul.mubr.msk.f32.vlgmr.msra.gmra.mxu0 %vm692_vm6, %v1095_v25 }
 0x50f   :  { %v1041_v52 = vpop.f32.mrf.mxu1  ;;  %1047 = vmatprep.mubr.msk.f32.mxu0 %vm1130_vm0, %v1129_v0 }
 0x510   :  { %1102 = vtanh.f32 %v680_v51 }
 0x511   :  { %v1097_v53 = vpop.eup %1096 }
 0x512   :  { %1048 = vmatmul.mubr.msk.f32.gmra.mxu0 %vm692_vm6, %v1097_v53 }
 0x513   :  { %1050 = vmatprep.mubr.msk.f32.mxu0 %vm1130_vm0, %v1129_v0 }
 0x515   :  { %v1099_v54 = vpop.eup %1098 }
 0x516   :  { %1051 = vmatmul.mubr.msk.f32.gmra.mxu0 %vm692_vm6, %v1099_v54 }
 0x517   :  { %1053 = vmatprep.mubr.msk.f32.mxu0 %vm1130_vm0, %v1129_v0 }
 0x519   :  { %v1101_v55 = vpop.eup %1100 }
 0x51a   :  { %1054 = vmatmul.mubr.msk.f32.gmra.mxu0 %vm692_vm6, %v1101_v55 }
 0x51b   :  { %1056 = vmatprep.mubr.msk.f32.mxu0 %vm1130_vm0, %v1129_v0 }
 0x51d   :  { %v1103_v56 = vpop.eup %1102 }
 0x51e   :  { %1057 = vmatmul.mubr.msk.f32.gmra.mxu0 %vm692_vm6, %v1103_v56 }
 0x5ce   :  { %v777_v59 = vpop.f32.mrf.mxu0 }
 0x5cf   :  { %v778_v60 = vadd.f32 %v777_v59, %v691_v58 }
 0x5d0   :  { %v1046_v61 = vpop.f32.mrf.mxu0 }
 0x5d1   :  { %801 = vst [vmem:[%s1389_s3] sm:$0xff] %v778_v60 }
 0x5d2   :  { %v782_v62 = vpop.f32.mrf.mxu0 }
 0x5d3   :  { %v783_v63 = vadd.f32 %v782_v62, %v691_v58 }
 0x5d4   :  { %v1049_v1 = vpop.f32.mrf.mxu0 }
 0x5d5   :  { %802 = vst [vmem:[%s1389_s3 + $0x8] sm:$0xff] %v783_v63 }
 0x5d6   :  { %v787_v0 = vpop.f32.mrf.mxu0 }
 0x5d7   :  { %v788_v2 = vadd.f32 %v787_v0, %v691_v58 }
 0x5d8   :  { %v1052_v3 = vpop.f32.mrf.mxu0 }
 0x5d9   :  { %803 = vst [vmem:[%s1389_s3 + $0x10] sm:$0xff] %v788_v2 }
 0x5da   :  { %v792_v28 = vpop.f32.mrf.mxu0 }
 0x5db   :  { %v793_v30 = vadd.f32 %v792_v28, %v691_v58 }
 0x5dc   :  { %v1055_v4 = vpop.f32.mrf.mxu0 }
 0x5dd   :  { %804 = vst [vmem:[%s1389_s3 + $0x18] sm:$0xff] %v793_v30 }
 0x5de   :  { %v797_v5 = vpop.f32.mrf.mxu0 }
 0x5df   :  { %v798_v6 = vadd.f32 %v797_v5, %v691_v58 }
 0x5e0   :  { %v1058_v7 = vpop.f32.mrf.mxu0 }
 0x5e1   :  { %805 = vst [vmem:[%s1389_s3 + $0x20] sm:$0xff] %v798_v6 }
 0x5e2   :  { %810 = vsyncpa [#allocation3], 1 }

</bundles_post_ra>
